<compile_context>
chip_gen: v6e
topology: v6e:2x2x1
jax: 0.10.0
libtpu: 0.0.40
codegen_flags: <defaults>
</compile_context>

<pallas_src>
import functools

import jax
import jax.numpy as jnp
from jax.experimental import pallas as pl
from jax.experimental.pallas import tpu as pltpu


def _round_up(v, m):
    return (v + m - 1) // m * m


# ----------------------------------------------------------------------------
# Fused SE kernel: one grid step == one batch element.
#   x_ref : (1, HWp, Cp)  activations (channels-last, spatial flattened)
#   w1_ref: (Cp, Hp)      Linear1 weight, [in, out] layout, zero-padded
#   w2_ref: (Hp, Cp)      Linear2 weight, [in, out] layout, zero-padded
#   o_ref : (1, HWp, Cp)  x * sigmoid(W2 relu(W1 gap(x)))
# ----------------------------------------------------------------------------
def _se_kernel(x_ref, w1_ref, w2_ref, o_ref, *, inv_hw):
    x = x_ref[0]                                            # [HWp, Cp]
    # Global average pool over spatial.  Padded spatial rows are zero, so sum
    # then multiply by 1 / (true H*W) gives the exact mean.
    y = jnp.sum(x, axis=0, keepdims=True) * inv_hw          # [1, Cp]
    # fc1 + ReLU  (padded hidden columns of w1 are zero -> relu(0) = 0).
    h = jnp.maximum(
        jnp.dot(y, w1_ref[...], preferred_element_type=jnp.float32), 0.0)
    # fc2 + Sigmoid (padded hidden rows of w2 are zero -> no contribution;
    # padded output channels only scale zero-padded activations).
    s = jax.nn.sigmoid(
        jnp.dot(h, w2_ref[...], preferred_element_type=jnp.float32))
    # Channel-wise rescale, lane-dense store.
    o_ref[0] = (x * s).astype(o_ref.dtype)


# ----------------------------------------------------------------------------
# Wrapper: NCHW in / NCHW out, PyTorch nn.Linear weight layout ([out, in]).
# ----------------------------------------------------------------------------
def se_block(x_nchw, w1, w2):
    B, C, H, W = x_nchw.shape
    Ch = w1.shape[0]          # C // reduction
    HW = H * W

    # Channels-last so C maps to the 128-wide lane axis.
    x = jnp.transpose(x_nchw, (0, 2, 3, 1)).reshape(B, HW, C)

    # Tile alignment: lanes (last dim) -> multiple of 128, sublanes -> 8.
    Cp = _round_up(C, 128)
    Hp = _round_up(Ch, 128)
    HWp = _round_up(HW, 8)

    xp = jnp.pad(x, ((0, 0), (0, HWp - HW), (0, Cp - C)))
    w1p = jnp.pad(jnp.transpose(w1), ((0, Cp - C), (0, Hp - Ch)))   # [Cp, Hp]
    w2p = jnp.pad(jnp.transpose(w2), ((0, Hp - Ch), (0, Cp - C)))   # [Hp, Cp]

    out = pl.pallas_call(
        functools.partial(_se_kernel, inv_hw=1.0 / HW),
        out_shape=jax.ShapeDtypeStruct((B, HWp, Cp), x.dtype),
        grid_spec=pltpu.PrefetchScalarGridSpec(
            num_scalar_prefetch=0,
            grid=(B,),
            in_specs=[
                pl.BlockSpec((1, HWp, Cp), lambda b: (b, 0, 0)),
                pl.BlockSpec((Cp, Hp), lambda b: (0, 0)),
                pl.BlockSpec((Hp, Cp), lambda b: (0, 0)),
            ],
            out_specs=pl.BlockSpec((1, HWp, Cp), lambda b: (b, 0, 0)),
        ),
        compiler_params=pltpu.CompilerParams(
            dimension_semantics=("parallel",)),
    )(xp, w1p, w2p)

    out = out[:, :HW, :C].reshape(B, H, W, C)
    return jnp.transpose(out, (0, 3, 1, 2))                 # back to NCHW


# Pure-JAX reference (mirrors the PyTorch SEBlock.forward).
def se_block_ref(x, w1, w2):
    y = jnp.mean(x, axis=(2, 3))                            # [B, C]
    y = jnp.maximum(y @ jnp.transpose(w1), 0.0)             # [B, C//r]
    y = jax.nn.sigmoid(y @ jnp.transpose(w2))               # [B, C]
    return x * y[:, :, None, None]


if __name__ == "__main__":
    key = jax.random.PRNGKey(0)
    kx, k1, k2 = jax.random.split(key, 3)

    # Small shapes consistent with the module: in_channels=128, reduction=16.
    B, C, H, W = 2, 128, 16, 16
    reduction = 16
    Ch = C // reduction

    x = jax.random.normal(kx, (B, C, H, W), jnp.float32)
    # nn.Linear weights, [out_features, in_features], bias=False.
    w1 = jax.random.normal(k1, (Ch, C), jnp.float32) * (1.0 / jnp.sqrt(C))
    w2 = jax.random.normal(k2, (C, Ch), jnp.float32) * (1.0 / jnp.sqrt(Ch))

    fwd = jax.jit(se_block)
    out = jax.block_until_ready(fwd(x, w1, w2))

    assert out.shape == (B, C, H, W), out.shape
    assert bool(jnp.all(jnp.isfinite(out)))
    ref = se_block_ref(x, w1, w2)
    assert bool(jnp.allclose(out, ref, rtol=1e-5, atol=1e-5)), (
        float(jnp.max(jnp.abs(out - ref))))
    print("KERNEL_OK")
</pallas_src>

<mosaic_0001>
module attributes {stable_mosaic.version = 11 : i64} {
  func.func @_se_kernel(%arg0: i32, %arg1: memref<1x256x128xf32, #tpu.memory_space<vmem>>, %arg2: memref<128x128xf32, #tpu.memory_space<vmem>>, %arg3: memref<128x128xf32, #tpu.memory_space<vmem>>, %arg4: memref<1x256x128xf32, #tpu.memory_space<vmem>>) attributes {dimension_semantics = [#tpu.dimension_semantics<parallel>], iteration_bounds = array<i64: 2>, scalar_prefetch = 0 : i64, scratch_operands = 0 : i64, tpu.core_type = #tpu.core_type<tc>, window_params = [{transform_indices = @transform_0, window_bounds = array<i64: 1, 256, 128>}, {pipeline_mode = #tpu.pipeline_mode<synchronous>, transform_indices = @transform_1, window_bounds = array<i64: 128, 128>}, {pipeline_mode = #tpu.pipeline_mode<synchronous>, transform_indices = @transform_2, window_bounds = array<i64: 128, 128>}, {transform_indices = @transform_3, window_bounds = array<i64: 1, 256, 128>}]} {
    %c0 = arith.constant 0 : index
    %c0_0 = arith.constant 0 : index
    %c0_1 = arith.constant 0 : index
    %0 = vector.load %arg1[%c0, %c0_0, %c0_1] : memref<1x256x128xf32, #tpu.memory_space<vmem>>, vector<1x256x128xf32>
    %1 = vector.shape_cast %0 : vector<1x256x128xf32> to vector<256x128xf32>
    %cst = arith.constant dense<0.000000e+00> : vector<128xf32>
    %2 = vector.multi_reduction <add>, %1, %cst [0] : vector<256x128xf32> to vector<128xf32>
    %3 = vector.shape_cast %2 : vector<128xf32> to vector<1x128xf32>
    %cst_2 = arith.constant 3.906250e-03 : f32
    %4 = vector.broadcast %cst_2 : f32 to vector<1x128xf32>
    %5 = arith.mulf %3, %4 : vector<1x128xf32>
    %c0_3 = arith.constant 0 : index
    %c0_4 = arith.constant 0 : index
    %6 = vector.load %arg2[%c0_3, %c0_4] : memref<128x128xf32, #tpu.memory_space<vmem>>, vector<128x128xf32>
    %cst_5 = arith.constant dense<0.000000e+00> : vector<1x128xf32>
    %7 = tpu.matmul %5, %6, %cst_5 {dimension_numbers = #tpu.dot_dimension_numbers<[1], [0], [0], [1], [0, 0, 1, 1], [], []>} : vector<1x128xf32>, vector<128x128xf32>, vector<1x128xf32> -> vector<1x128xf32>
    %cst_6 = arith.constant 0.000000e+00 : f32
    %8 = vector.broadcast %cst_6 : f32 to vector<1x128xf32>
    %9 = arith.maximumf %7, %8 : vector<1x128xf32>
    %c0_7 = arith.constant 0 : index
    %c0_8 = arith.constant 0 : index
    %10 = vector.load %arg3[%c0_7, %c0_8] : memref<128x128xf32, #tpu.memory_space<vmem>>, vector<128x128xf32>
    %cst_9 = arith.constant dense<0.000000e+00> : vector<1x128xf32>
    %11 = tpu.matmul %9, %10, %cst_9 {dimension_numbers = #tpu.dot_dimension_numbers<[1], [0], [0], [1], [0, 0, 1, 1], [], []>} : vector<1x128xf32>, vector<128x128xf32>, vector<1x128xf32> -> vector<1x128xf32>
    %12 = arith.negf %11 : vector<1x128xf32>
    %13 = math.exp %12 : vector<1x128xf32>
    %cst_10 = arith.constant 1.000000e+00 : f32
    %14 = vector.broadcast %cst_10 : f32 to vector<1x128xf32>
    %15 = arith.addf %14, %13 : vector<1x128xf32>
    %16 = arith.divf %14, %15 : vector<1x128xf32>
    %17 = vector.broadcast %16 : vector<1x128xf32> to vector<256x128xf32>
    %18 = arith.mulf %1, %17 : vector<256x128xf32>
    %c0_11 = arith.constant 0 : index
    %c0_12 = arith.constant 0 : index
    %c0_13 = arith.constant 0 : index
    %19 = vector.load %arg4[%c0_11, %c0_12, %c0_13] : memref<1x256x128xf32, #tpu.memory_space<vmem>>, vector<1x256x128xf32>
    %20 = vector.shape_cast %19 : vector<1x256x128xf32> to vector<256x128xf32>
    %21 = vector.shape_cast %18 : vector<256x128xf32> to vector<1x256x128xf32>
    tpu.vector_store %arg4[%c0_11, %c0_12, %c0_13], %21 {strides = array<i32>} : memref<1x256x128xf32, #tpu.memory_space<vmem>>, vector<1x256x128xf32>,
    return
  }
  func.func @transform_0(%arg0: i32) -> (i32, i32, i32) {
    %c0_i32 = arith.constant 0 : i32
    %c0_i32_0 = arith.constant 0 : i32
    %c0_i32_1 = arith.constant 0 : i32
    return %arg0, %c0_i32, %c0_i32_0 : i32, i32, i32
  }
  func.func @transform_1(%arg0: i32) -> (i32, i32) {
    %c0_i32 = arith.constant 0 : i32
    %c0_i32_0 = arith.constant 0 : i32
    %c0_i32_1 = arith.constant 0 : i32
    return %c0_i32, %c0_i32_0 : i32, i32
  }
  func.func @transform_2(%arg0: i32) -> (i32, i32) {
    %c0_i32 = arith.constant 0 : i32
    %c0_i32_0 = arith.constant 0 : i32
    %c0_i32_1 = arith.constant 0 : i32
    return %c0_i32, %c0_i32_0 : i32, i32
  }
  func.func @transform_3(%arg0: i32) -> (i32, i32, i32) {
    %c0_i32 = arith.constant 0 : i32
    %c0_i32_0 = arith.constant 0 : i32
    %c0_i32_1 = arith.constant 0 : i32
    return %arg0, %c0_i32, %c0_i32_0 : i32, i32, i32
  }
}

</mosaic_0001>

<bundles_post_ra>
// kernel: se_block.1
= control target key start
LH: loop header
LB: loop body
LE: loop exit
PB: predicated region body
PF: predicated region fallthrough
CT: control target
= control target key end

     0   :  { %8 = vsyncpa [#allocation3], 0  ;;  %s1248_s0 = inlined_call_operand.vmem [shape: f32[2,256,128], index: 0, kind: input, shape index: {}]   ;;  %s1249_s1 = inlined_call_operand.vmem [shape: f32[128,128], index: 1, kind: input, shape index: {}]   ;;  %s1250_s2 = inlined_call_operand.vmem [shape: f32[128,128], index: 2, kind: input, shape index: {}]   ;;  %s1251_s3 = inlined_call_operand.hbm [shape: f32[2,256,128], index: 3, kind: output, shape index: {}]  }
   0x1   :  { %10 = vsyncpa [#allocation3 + $0x1], 0  ;;  %s815_s12 = smov 0   ;;  %s817_s13 = smov 0  }
   0x2   :  { %s819_s14 = smov 0   ;;  %s821_s15 = smov 0  }
   0x3 LB: > { %s836_s16 = sadd.s32 4294967295, %s788_s15   ;;  %s562_s17 = sadd.s32 4294967294, %s788_s15   ;;  %s788_s15 = sphi %s821_s15, %s1257_s15   ;;  %s784_s14 = sphi %s819_s14, %s1256_s14   ;;  %s780_s13 = sphi %s817_s13, %s1255_s13   ;;  %s776_s12 = sphi %s815_s12, %s1254_s12  }
   0x4   : > { %s840_s18 = sadd.s32 1, %s788_s15   ;;  %s91_s19 = sadd.s32 1, %s784_s14 }
   0x5   : > { %s88_s20 = ssub.s32 %s788_s15, %s840_s18  ;;  %p101_p0 = scmp.ne.s32.totalorder %s784_s14, %s780_s13 }
   0x6   : > { %p89_p1 = scmp.eq.s32.totalorder %s88_s20, 0  ;;  %p102_p2 = scmp.eq.s32.totalorder %s836_s16, 1 }
   0x7   : > { %p107_p3 = scmp.ne.s32.totalorder %s780_s13, %s776_s12  ;;  %p108_p4 = scmp.eq.s32.totalorder %s562_s17, 1 }
   0x8   : > { %s851_s21 = scalar_select %p89_p1, %s784_s14, %s91_s19  }
   0x9   : > { %p853_p5 = por %p102_p2, %p101_p0  ;;  %p857_p6 = por %p108_p4, %p107_p3 }
   0xa   : > { %p565_p7 = scmp.ge.s32.totalorder %s788_s15, 1  ;;  %p140_p8 = scmp.lt.s32.totalorder %s788_s15, 3 }
   0xc   : > { %p141_p9 = pnand %p565_p7, %p140_p8 }
   0xd   : > { %p164_p10 = scmp.lt.s32.totalorder (!%p141_p9), %s836_s16, 1  ;;  %s161_s19 = sand.u32 (!%p141_p9), 1, %s780_s13  }
   0xe   : > { %144 = sbr.rel (%p141_p9) target bundleno = 554 (0x22a), region = 32  ;;  %s566_s20 = sshll.u32 (!%p141_p9), %s161_s19, 8 }
   0xf   : > { %s1143_s25 = scalar_lea.vmem (!%p141_p9), [#allocation2], %s566_s20  ;;  %s576_s26 = sshll.u32 (!%p141_p9), %s836_s16, 12 }
  0x10   : > { %s500_s27 = sshll.u32 (!%p141_p9), %s1143_s25, 4  ;;  %s1186_s29 = scalar_lea.hbm (!%p141_p9), %s1251_s3, %s576_s26  ;;  %s1188_s27 = int_to_ptr.vmem [resolvable:$true] %s500_s27 }
  0x11   : > { %s728_s4 = scalar_lea.vmem (!%p141_p9), %s1188_s27, 4096  ;;  %s792_s5 = smov (!%p141_p9), [#allocation2]  }
  0x12   : > { %p729_p11 = scmp.ne.s32.totalorder (!%p141_p9), %s1188_s27, %s728_s4 }
  0x13   : > { %v254_v0 = vld [vmem:[%s1249_s1 + $0x78] sm:$0xff]  ;;  %v790_v1 = vmov 0.0   ;;  %v253_v2 = vld [vmem:[%s1249_s1 + $0x70] sm:$0xff]  ;;  %vm791_vm0 = vmmov 0   ;;  %v252_v3 = vld [vmem:[%s1249_s1 + $0x68] sm:$0xff]  ;;  %s165_s30 = scalar_select %p164_p10, %s836_s16, 1 }
  0x14   : > { %611 = vmatprep.subr.mxu0 %v790_v1  ;;  %643 = vmatprep.mubr.msk.f32.mxu0 %vm791_vm0, %v790_v1  ;;  %v251_v4 = vld [vmem:[%s1249_s1 + $0x60] sm:$0xff]  ;;  %v341_v5 = vld [vmem:[%s1250_s2 + $0x78] sm:$0xff]  ;;  %v340_v6 = vld [vmem:[%s1250_s2 + $0x70] sm:$0xff]  ;;  %p730_p12 = pnand %p729_p11, %p853_p5 }
  0x15   : > { %612 = vmatpush3.msra.mxu0 %v254_v0  ;;  %646 = vmatprep.subr.mxu1 %v790_v1  ;;  %s575_s6 = sshll.u32 %s165_s30, 8  ;;  %v250_v7 = vld [vmem:[%s1249_s1 + $0x58] sm:$0xff]  ;;  %v339_v8 = vld [vmem:[%s1250_s2 + $0x68] sm:$0xff]  ;;  %v249_v13 = vld [vmem:[%s1249_s1 + $0x50] sm:$0xff]  ;;  %s1208_s30 = scalar_lea.sflag [#allocation3], %s161_s19 }
  0x16   : > { %613 = vmatprep.subr.mxu0 %v790_v1  ;;  %678 = vmatprep.mubr.msk.f32.mxu1 %vm791_vm0, %v790_v1  ;;  %s895_s24 = scalar_lea.vmem %s1248_s0, %s575_s6  ;;  %v338_v15 = vld [vmem:[%s1250_s2 + $0x60] sm:$0xff]  ;;  %v248_v17 = vld [vmem:[%s1249_s1 + $0x48] sm:$0xff]  ;;  %v337_v19 = vld [vmem:[%s1250_s2 + $0x58] sm:$0xff]  ;;  %p731_p13 = pneg %p730_p12 }
  0x17   : > { %614 = vmatpush3.msra.mxu0 %v253_v2  ;;  %647 = vmatpush3.msra.mxu1 %v341_v5  ;;  %v902_v9 = vld [vmem:[%s895_s24] sm:$0xff]  ;;  %v905_v10 = vld [vmem:[%s895_s24 + $0x8] sm:$0xff]  ;;  %v908_v11 = vld [vmem:[%s895_s24 + $0x10] sm:$0xff]  ;;  %s732_s6 = sshll.u32 %s792_s5, 4  ;;  %s733_s6 = int_to_ptr.vmem [resolvable:$false] %s732_s6 }
  0x18   : > { %615 = vmatprep.subr.mxu0 %v790_v1  ;;  %648 = vmatprep.subr.mxu1 %v790_v1  ;;  %v201_v12 = vadd.f32 %v905_v10, %v902_v9  ;;  %v918_v14 = vld [vmem:[%s895_s24 + $0x18] sm:$0xff]  ;;  %v930_v18 = vld [vmem:[%s895_s24 + $0x20] sm:$0xff]  ;;  %v942_v22 = vld [vmem:[%s895_s24 + $0x28] sm:$0xff]  ;;  %s734_s7 = scalar_lea.vmem %s733_s6, 8192  ;;  %p735_p0 = scmp.lt.s32.totalorder %s1188_s27, %s733_s6 }
  0x19   : > { %616 = vmatpush3.msra.mxu0 %v252_v3  ;;  %649 = vmatpush3.msra.mxu1 %v340_v6  ;;  %v247_v21 = vld [vmem:[%s1249_s1 + $0x40] sm:$0xff]  ;;  %v246_v24 = vld [vmem:[%s1249_s1 + $0x38] sm:$0xff]  ;;  %v951_v25 = vld [vmem:[%s895_s24 + $0x30] sm:$0xff]  ;;  %p736_p1 = scmp.lt.s32.totalorder %s734_s7, %s728_s4 }
  0x1a   : > { %617 = vmatprep.subr.mxu0 %v790_v1  ;;  %650 = vmatprep.subr.mxu1 %v790_v1  ;;  %v202_v16 = vadd.f32 %v201_v12, %v908_v11  ;;  %v245_v27 = vld [vmem:[%s1249_s1 + $0x30] sm:$0xff]  ;;  %v960_v28 = vld [vmem:[%s895_s24 + $0x38] sm:$0xff]  ;;  %v335_v31 = vld [vmem:[%s1250_s2 + $0x48] sm:$0xff] }
  0x1b   : > { %618 = vmatpush3.msra.mxu0 %v251_v4  ;;  %651 = vmatpush3.msra.mxu1 %v339_v8  ;;  %v336_v29 = vld [vmem:[%s1250_s2 + $0x50] sm:$0xff]  ;;  %v244_v32 = vld [vmem:[%s1249_s1 + $0x28] sm:$0xff]  ;;  %v974_v33 = vld [vmem:[%s895_s24 + $0x40] sm:$0xff]  ;;  %p737_p2 = por %p736_p1, %p735_p0 }
  0x1c   : > { %619 = vmatprep.subr.mxu0 %v790_v1  ;;  %652 = vmatprep.subr.mxu1 %v790_v1  ;;  %v203_v20 = vadd.f32 %v202_v16, %v918_v14  ;;  %v334_v34 = vld [vmem:[%s1250_s2 + $0x40] sm:$0xff]  ;;  %v986_v37 = vld [vmem:[%s895_s24 + $0x48] sm:$0xff]  ;;  %v333_v38 = vld [vmem:[%s1250_s2 + $0x38] sm:$0xff] }
  0x1d   : > { %620 = vmatpush3.msra.mxu0 %v250_v7  ;;  %653 = vmatpush3.msra.mxu1 %v338_v15  ;;  %v243_v36 = vld [vmem:[%s1249_s1 + $0x20] sm:$0xff]  ;;  %v242_v40 = vld [vmem:[%s1249_s1 + $0x18] sm:$0xff]  ;;  %v998_v41 = vld [vmem:[%s895_s24 + $0x50] sm:$0xff]  ;;  %p738_p3 = pnand %p737_p2, %p731_p13 }
  0x1e   : > { %621 = vmatprep.subr.mxu0 %v790_v1  ;;  %654 = vmatprep.subr.mxu1 %v790_v1  ;;  %v204_v23 = vadd.f32 %v203_v20, %v930_v18  ;;  %v332_v42 = vld [vmem:[%s1250_s2 + $0x30] sm:$0xff]  ;;  %v1010_v45 = vld [vmem:[%s895_s24 + $0x58] sm:$0xff]  ;;  %v331_v46 = vld [vmem:[%s1250_s2 + $0x28] sm:$0xff] }
  0x1f   : > { %622 = vmatpush3.msra.mxu0 %v249_v13  ;;  %655 = vmatpush3.msra.mxu1 %v337_v19  ;;  %v241_v44 = vld [vmem:[%s1249_s1 + $0x10] sm:$0xff]  ;;  %v240_v48 = vld [vmem:[%s1249_s1 + $0x8] sm:$0xff]  ;;  %v1022_v49 = vld [vmem:[%s895_s24 + $0x60] sm:$0xff] }
  0x20   : > { %623 = vmatprep.subr.mxu0 %v790_v1  ;;  %656 = vmatprep.subr.mxu1 %v790_v1  ;;  %v205_v26 = vadd.f32 %v204_v23, %v942_v22  ;;  %v330_v50 = vld [vmem:[%s1250_s2 + $0x20] sm:$0xff]  ;;  %v1034_v53 = vld [vmem:[%s895_s24 + $0x68] sm:$0xff]  ;;  %v329_v54 = vld [vmem:[%s1250_s2 + $0x18] sm:$0xff] }
  0x21   : > { %624 = vmatpush3.msra.mxu0 %v248_v17  ;;  %657 = vmatpush3.msra.mxu1 %v336_v29  ;;  %v239_v52 = vld [vmem:[%s1249_s1] sm:$0xff]  ;;  %v1043_v56 = vld [vmem:[%s895_s24 + $0x70] sm:$0xff]  ;;  %v1051_v59 = vld [vmem:[%s895_s24 + $0x78] sm:$0xff] }
  0x22   : > { %625 = vmatprep.subr.mxu0 %v790_v1  ;;  %v206_v30 = vadd.f32 %v205_v26, %v951_v25  ;;  %658 = vmatprep.subr.mxu1 %v790_v1  ;;  %v328_v57 = vld [vmem:[%s1250_s2 + $0x10] sm:$0xff]  ;;  %v1056_v61 = vld [vmem:[%s895_s24 + $0x80] sm:$0xff]  ;;  %v1061_v63 = vld [vmem:[%s895_s24 + $0x88] sm:$0xff] }
  0x23   : > { %626 = vmatpush3.msra.mxu0 %v247_v21  ;;  %659 = vmatpush3.msra.mxu1 %v335_v31  ;;  %v1065_v2 = vld [vmem:[%s895_s24 + $0x90] sm:$0xff]  ;;  %v1069_v4 = vld [vmem:[%s895_s24 + $0x98] sm:$0xff]  ;;  %v1073_v6 = vld [vmem:[%s895_s24 + $0xa0] sm:$0xff] }
  0x24   : > { %627 = vmatprep.subr.mxu0 %v790_v1  ;;  %v207_v35 = vadd.f32 %v206_v30, %v960_v28  ;;  %660 = vmatprep.subr.mxu1 %v790_v1  ;;  %v1077_v8 = vld [vmem:[%s895_s24 + $0xa8] sm:$0xff]  ;;  %v1081_v13 = vld [vmem:[%s895_s24 + $0xb0] sm:$0xff]  ;;  %v1085_v16 = vld [vmem:[%s895_s24 + $0xb8] sm:$0xff] }
  0x25   : > { %628 = vmatpush3.msra.mxu0 %v246_v24  ;;  %661 = vmatpush3.msra.mxu1 %v334_v34  ;;  %v1089_v19 = vld [vmem:[%s895_s24 + $0xc0] sm:$0xff]  ;;  %v1093_v21 = vld [vmem:[%s895_s24 + $0xc8] sm:$0xff]  ;;  %v1097_v24 = vld [vmem:[%s895_s24 + $0xd0] sm:$0xff] }
  0x26   : > { %629 = vmatprep.subr.mxu0 %v790_v1  ;;  %v208_v39 = vadd.f32 %v207_v35, %v974_v33  ;;  %662 = vmatprep.subr.mxu1 %v790_v1  ;;  %v1105_v30 = vld [vmem:[%s895_s24 + $0xe0] sm:$0xff]  ;;  %v1113_v35 = vld [vmem:[%s895_s24 + $0xf0] sm:$0xff] }
  0x27   : > { %630 = vmatpush3.msra.mxu0 %v245_v27  ;;  %663 = vmatpush3.msra.mxu1 %v333_v38  ;;  %v1101_v27 = vld [vmem:[%s895_s24 + $0xd8] sm:$0xff] }
  0x28   : > { %631 = vmatprep.subr.mxu0 %v790_v1  ;;  %v209_v43 = vadd.f32 %v208_v39, %v986_v37  ;;  %664 = vmatprep.subr.mxu1 %v790_v1  ;;  %v1117_v38 = vld [vmem:[%s895_s24 + $0xf8] sm:$0xff] }
  0x29   : > { %632 = vmatpush3.msra.mxu0 %v244_v32  ;;  %665 = vmatpush3.msra.mxu1 %v332_v42  ;;  %v1109_v32 = vld [vmem:[%s895_s24 + $0xe8] sm:$0xff] }
  0x2a   : > { %633 = vmatprep.subr.mxu0 %v790_v1  ;;  %v210_v47 = vadd.f32 %v209_v43, %v998_v41  ;;  %666 = vmatprep.subr.mxu1 %v790_v1 }
  0x2b   : > { %634 = vmatpush3.msra.mxu0 %v243_v36  ;;  %667 = vmatpush3.msra.mxu1 %v331_v46 }
  0x2c   : > { %635 = vmatprep.subr.mxu0 %v790_v1  ;;  %v211_v51 = vadd.f32 %v210_v47, %v1010_v45  ;;  %668 = vmatprep.subr.mxu1 %v790_v1 }
  0x2d   : > { %636 = vmatpush3.msra.mxu0 %v242_v40  ;;  %669 = vmatpush3.msra.mxu1 %v330_v50 }
  0x2e   : > { %637 = vmatprep.subr.mxu0 %v790_v1  ;;  %v212_v55 = vadd.f32 %v211_v51, %v1022_v49  ;;  %670 = vmatprep.subr.mxu1 %v790_v1  ;;  %v327_v51 = vld [vmem:[%s1250_s2 + $0x8] sm:$0xff] }
  0x2f   : > { %638 = vmatpush3.msra.mxu0 %v241_v44  ;;  %671 = vmatpush3.msra.mxu1 %v329_v54 }
  0x30   : > { %639 = vmatprep.subr.mxu0 %v790_v1  ;;  %v213_v58 = vadd.f32 %v212_v55, %v1034_v53  ;;  %672 = vmatprep.subr.mxu1 %v790_v1 }
  0x31   : > { %640 = vmatpush3.msra.mxu0 %v240_v48  ;;  %673 = vmatpush3.msra.mxu1 %v328_v57 }
  0x32   : > { %641 = vmatprep.subr.mxu0 %v790_v1  ;;  %v214_v60 = vadd.f32 %v213_v58, %v1043_v56  ;;  %674 = vmatprep.subr.mxu1 %v790_v1 }
  0x33   : > { %642 = vmatpush3.msra.mxu0 %v239_v52  ;;  %675 = vmatpush3.msra.mxu1 %v327_v51  ;;  %v326_v52 = vld [vmem:[%s1250_s2] sm:$0xff] }
  0x34   : > { %v215_v62 = vadd.f32 %v214_v60, %v1051_v59  ;;  %676 = vmatprep.subr.mxu1 %v790_v1 }
  0x35   : > { %677 = vmatpush3.msra.mxu1 %v326_v52 }
  0x36   : > { %v216_v0 = vadd.f32 %v215_v62, %v1056_v61 }
  0x38   : > { %v217_v3 = vadd.f32 %v216_v0, %v1061_v63 }
  0x3a   : > { %v218_v5 = vadd.f32 %v217_v3, %v1065_v2 }
  0x3c   : > { %v219_v7 = vadd.f32 %v218_v5, %v1069_v4  ;;  %v418_v5 = vlaneseq }
  0x3e   : > { %v220_v12 = vadd.f32 %v219_v7, %v1073_v6  ;;  %v419_v1 = vshrl.u32 %v418_v5, 7 }
  0x40   : > { %v221_v15 = vadd.f32 %v220_v12, %v1077_v8  ;;  %v420_v7 = vsub.s32 0, %v419_v1 }
  0x42   : > { %v222_v17 = vadd.f32 %v221_v15, %v1081_v13 }
  0x44   : > { %v223_v20 = vadd.f32 %v222_v17, %v1085_v16 }
  0x46   : > { %v224_v23 = vadd.f32 %v223_v20, %v1089_v19 }
  0x48   : > { %v225_v26 = vadd.f32 %v224_v23, %v1093_v21 }
  0x4a   : > { %v226_v29 = vadd.f32 %v225_v26, %v1097_v24 }
  0x4c   : > { %v227_v31 = vadd.f32 %v226_v29, %v1101_v27 }
  0x4e   : > { %v228_v34 = vadd.f32 %v227_v31, %v1105_v30 }
  0x50   : > { %v229_v36 = vadd.f32 %v228_v34, %v1109_v32 }
  0x52   : > { %v230_v39 = vadd.f32 %v229_v36, %v1113_v35 }
  0x54   : > { %v231_v40 = vadd.f32 %v230_v39, %v1117_v38 }
  0x56   : > { %v232_v42 = vrot.slane %v231_v40, 4 }
  0x58   : > { %v233_v43 = vadd.f32 %v232_v42, %v231_v40 }
  0x5a   : > { %v234_v44 = vrot.slane %v233_v43, 2 }
  0x5c   : > { %v235_v46 = vadd.f32 %v234_v44, %v233_v43 }
  0x5e   : > { %v236_v47 = vrot.slane %v235_v46, 1 }
  0x60   : > { %v237_v48 = vadd.f32 %v236_v47, %v235_v46 }
  0x62   : > { %v238_v50 = vmul.f32 0.00390625, %v237_v48 }
  0x64   : > { %644 = vmatmul.mubr.f32.vlgmr.msra.gmra.mxu0 %v238_v50 }
 0x124   : > { %v321_v54 = vpop.f32.mrf.mxu0 }
 0x125   : > { %v325_v55 = vmax.f32 %v321_v54, 0.0 }
 0x126   : > { %v645_v57 = vpop.f32.mrf.mxu0 }
 0x127   : > { %679 = vmatmul.mubr.f32.vlgmr.msra.gmra.mxu1 %v325_v55 }
 0x1e7   : > { %v408_v58 = vpop.f32.mrf.mxu1 }
 0x1e8   : > { %v569_v60 = vmul.f32 -1.442695, %v408_v58 }
 0x1e9   : > { %v680_v62 = vpop.f32.mrf.mxu1 }
 0x1ea   : > { %724 = vpow2.f32 %v569_v60 }
 0x1f7   : > { %v725_v0 = vpop.eup %724 }
 0x1f8   : > { %v415_v3 = vadd.f32 1.0, %v725_v0 }
 0x1fa   : > { %726 = vrcp.f32 %v415_v3 }
 0x207   : > { %v727_v12 = vpop.eup %726 }
 0x208   : > { %v421_v15 = vrot.slane %v727_v12, %v420_v7 }
 0x20a   : > { %v422_v17 = vmul.f32 %v421_v15, %v902_v9  ;;  %v423_v20 = vmul.f32 %v421_v15, %v905_v10  ;;  %v424_v23 = vmul.f32 %v421_v15, %v908_v11  ;;  %v425_v26 = vmul.f32 %v421_v15, %v918_v14 }
 0x20b   : > { %v426_v29 = vmul.f32 %v421_v15, %v930_v18  ;;  %v427_v31 = vmul.f32 %v421_v15, %v942_v22  ;;  %v428_v34 = vmul.f32 %v421_v15, %v951_v25  ;;  %v429_v36 = vmul.f32 %v421_v15, %v960_v28 }
 0x20c   : > { %v430_v39 = vmul.f32 %v421_v15, %v974_v33  ;;  %v431_v40 = vmul.f32 %v421_v15, %v986_v37  ;;  %v432_v9 = vmul.f32 %v421_v15, %v998_v41  ;;  %v433_v10 = vmul.f32 %v421_v15, %v1010_v45  ;;  %454 = vst [vmem:[%s1143_s25] sm:$0xff] %v422_v17 }
 0x20d   : > { %455 = vst [vmem:[%s1143_s25 + $0x8] sm:$0xff] %v423_v20  ;;  %456 = vst [vmem:[%s1143_s25 + $0x10] sm:$0xff] %v424_v23  ;;  %v434_v11 = vmul.f32 %v421_v15, %v1022_v49  ;;  %v435_v14 = vmul.f32 %v421_v15, %v1034_v53  ;;  %v436_v18 = vmul.f32 %v421_v15, %v1043_v56 }
 0x20e   : > { %457 = vst [vmem:[%s1143_s25 + $0x18] sm:$0xff] %v425_v26  ;;  %v437_v22 = vmul.f32 %v421_v15, %v1051_v59  ;;  %458 = vst [vmem:[%s1143_s25 + $0x20] sm:$0xff] %v426_v29  ;;  %v438_v25 = vmul.f32 %v421_v15, %v1056_v61  ;;  %v439_v28 = vmul.f32 %v421_v15, %v1061_v63 }
 0x20f   : > { %459 = vst [vmem:[%s1143_s25 + $0x28] sm:$0xff] %v427_v31  ;;  %460 = vst [vmem:[%s1143_s25 + $0x30] sm:$0xff] %v428_v34  ;;  %v440_v33 = vmul.f32 %v421_v15, %v1065_v2  ;;  %v441_v37 = vmul.f32 %v421_v15, %v1069_v4  ;;  %v442_v41 = vmul.f32 %v421_v15, %v1073_v6 }
 0x210   : > { %461 = vst [vmem:[%s1143_s25 + $0x38] sm:$0xff] %v429_v36  ;;  %462 = vst [vmem:[%s1143_s25 + $0x40] sm:$0xff] %v430_v39  ;;  %v443_v45 = vmul.f32 %v421_v15, %v1077_v8  ;;  %v444_v49 = vmul.f32 %v421_v15, %v1081_v13  ;;  %v445_v53 = vmul.f32 %v421_v15, %v1085_v16 }
 0x211   : > { %463 = vst [vmem:[%s1143_s25 + $0x48] sm:$0xff] %v431_v40  ;;  %464 = vst [vmem:[%s1143_s25 + $0x50] sm:$0xff] %v432_v9  ;;  %v446_v56 = vmul.f32 %v421_v15, %v1089_v19  ;;  %v447_v59 = vmul.f32 %v421_v15, %v1093_v21  ;;  %v448_v61 = vmul.f32 %v421_v15, %v1097_v24 }
 0x212   : > { %465 = vst [vmem:[%s1143_s25 + $0x58] sm:$0xff] %v433_v10  ;;  %466 = vst [vmem:[%s1143_s25 + $0x60] sm:$0xff] %v434_v11  ;;  %v449_v63 = vmul.f32 %v421_v15, %v1101_v27  ;;  %v450_v2 = vmul.f32 %v421_v15, %v1105_v30  ;;  %v451_v4 = vmul.f32 %v421_v15, %v1109_v32 }
 0x213   : > { %467 = vst [vmem:[%s1143_s25 + $0x68] sm:$0xff] %v435_v14  ;;  %468 = vst [vmem:[%s1143_s25 + $0x70] sm:$0xff] %v436_v18  ;;  %v452_v6 = vmul.f32 %v421_v15, %v1113_v35  ;;  %v453_v8 = vmul.f32 %v421_v15, %v1117_v38 }
 0x214   : > { %469 = vst [vmem:[%s1143_s25 + $0x78] sm:$0xff] %v437_v22  ;;  %470 = vst [vmem:[%s1143_s25 + $0x80] sm:$0xff] %v438_v25 }
 0x215   : > { %471 = vst [vmem:[%s1143_s25 + $0x88] sm:$0xff] %v439_v28  ;;  %472 = vst [vmem:[%s1143_s25 + $0x90] sm:$0xff] %v440_v33 }
 0x216   : > { %473 = vst [vmem:[%s1143_s25 + $0x98] sm:$0xff] %v441_v37  ;;  %474 = vst [vmem:[%s1143_s25 + $0xa0] sm:$0xff] %v442_v41 }
 0x217   : > { %475 = vst [vmem:[%s1143_s25 + $0xa8] sm:$0xff] %v443_v45  ;;  %476 = vst [vmem:[%s1143_s25 + $0xb0] sm:$0xff] %v444_v49 }
 0x218   : > { %477 = vst [vmem:[%s1143_s25 + $0xb8] sm:$0xff] %v445_v53  ;;  %478 = vst [vmem:[%s1143_s25 + $0xc0] sm:$0xff] %v446_v56 }
 0x219   : > { %479 = vst [vmem:[%s1143_s25 + $0xc8] sm:$0xff] %v447_v59  ;;  %480 = vst [vmem:[%s1143_s25 + $0xd0] sm:$0xff] %v448_v61 }
 0x21a   : > { %481 = vst [vmem:[%s1143_s25 + $0xd8] sm:$0xff] %v449_v63  ;;  %482 = vst [vmem:[%s1143_s25 + $0xe0] sm:$0xff] %v450_v2 }
 0x21b   : > { %483 = vst [vmem:[%s1143_s25 + $0xe8] sm:$0xff] %v451_v4  ;;  %484 = vst [vmem:[%s1143_s25 + $0xf0] sm:$0xff] %v452_v6 }
 0x21c   : > { %485 = vst [vmem:[%s1143_s25 + $0xf8] sm:$0xff] %v453_v8 }
 0x21d   : > { %741 = shalt.err (!%p738_p3)
}
 0x21e   : > { %s742_s8 = scalar_lea.hbm %s1186_s29, 4096  ;;  %s746_s11 = scalar_lea.hbm %s1251_s3, 8192 }
 0x21f   : > { %p743_p4 = scmp.ne.s32.totalorder %s1186_s29, %s742_s8  ;;  %p747_p9 = scmp.lt.s32.totalorder %s1186_s29, %s1251_s3 }
 0x220   : > { %p748_p10 = scmp.lt.s32.totalorder %s746_s11, %s742_s8 }
 0x221   : > { %p744_p7 = pnand %p743_p4, %p853_p5 }
 0x222   : > { %p749_p11 = por %p748_p10, %p747_p9 }
 0x223   : > { %p745_p8 = pneg %p744_p7 }
 0x225   : > { %p750_p12 = pnand %p749_p11, %p745_p8 }
 0x227   : > { %753 = shalt.err (!%p750_p12)
}
 0x228   : > { %s793_s19 = smov 128   ;;  %s794_s20 = smov 8  }
 0x229   : > { %681 = dma.vmem_to_hbm [thread:$0]  (%p853_p5), %s1188_s27, 4096, %s1186_s29, %s1208_s30, %s793_s19, %s793_s19, %s794_s20  }
 0x22a PF: > { %p687_p13 = scmp.ge.s32.totalorder %s788_s15, 2  ;;  %s515_s25 = sand.u32 1, %s776_s12  }
 0x22b   : > { %s516_s26 = scalar_lea.sflag [#allocation3], %s515_s25 }
 0x22c   : > { %p684_p0 = pnand %p687_p13, %p857_p6 }
 0x22e   : > { %p685_p1 = pneg %p684_p0 }
 0x230   : > { %771 = dma.done.wait (%p685_p1), %s516_s26, 4096  }
 0x231   : > { %773 = vsyncadd (%p685_p1), %s516_s26, 4294963200  ;;  %p13_p2 = scmp.ge.s32.totalorder %s840_s18, 4   ;;  %s1254_s12 = smov %s780_s13 }
 0x232   : > { %s1255_s13 = smov %s784_s14  ;;  %s1256_s14 = smov %s851_s21 }
 0x233   : > { %s1257_s15 = smov %s840_s18  ;;  %15 = sbr.rel (!%p13_p2) target bundleno = 3 (0x3), region = 67 }
 0x238   :  { %521 = vsyncpa [#allocation3], 1 }
 0x239   :  { %523 = vsyncpa [#allocation3 + $0x1], 1 }

</bundles_post_ra>
